<compile_context>
chip_gen: v7x
topology: tpu7x:2x2x1
jax: 0.10.0
libtpu: 0.0.40
codegen_flags: <defaults>
</compile_context>

<pallas_src>
import jax
import jax.numpy as jnp
from jax.experimental import pallas as pl
from jax.experimental.pallas import tpu as pltpu


def _round_up(n, m):
    return ((n + m - 1) // m) * m


def multitask_kernel(x_ref, w1_ref, b1_ref, w2_ref, b2_ref, w3t_ref, b3_ref, o_ref):
    # hidden1: (TILE_B, 8) @ (8, 128) -> f32 acc, bias + relu in f32.
    h1 = jnp.dot(x_ref[...], w1_ref[...], preferred_element_type=jnp.float32)
    h1 = jnp.maximum(h1 + b1_ref[...], 0.0)
    # hidden2: (TILE_B, 128) @ (128, 128) -> f32.
    h2 = jnp.dot(h1.astype(jnp.bfloat16), w2_ref[...],
                 preferred_element_type=jnp.float32)
    h2 = jnp.maximum(h2 + b2_ref[...], 0.0)
    # Output layer computed directly in (targets, batch) orientation so the HBM
    # writeback is compact (Tp sublane rows) instead of a 128-lane padded block:
    #   logits_t[t, b] = sum_k w3t[t, k] * h2[b, k]     (w3t is w3 transposed)
    logits_t = jnp.einsum("tk,bk->tb", w3t_ref[...], h2.astype(jnp.bfloat16),
                          preferred_element_type=jnp.float32)
    logits_t = logits_t + b3_ref[...]
    # sigmoid(x) = 0.5 * (1 + tanh(x/2)): single EUP op, numerically safe.
    o_ref[...] = (0.5 * (1.0 + jnp.tanh(0.5 * logits_t))).astype(o_ref.dtype)


def multitask_forward(x, params, *, tile_b=4096):
    """Forward pass of MultiTask. Returns (B, num_targets) float32."""
    w1, b1, w2, b2, w3, b3 = params
    B, F_IN = x.shape
    H1 = w1.shape[1]          # 100
    H2 = w2.shape[1]          # 20
    T = w3.shape[1]           # num_targets

    # Hidden dims lane-padded to 128 (zeros are exact: relu(0)=0 and padded weight
    # rows/cols are zero). Do NOT pad to 256: MXU is not the bottleneck here.
    H1p = _round_up(H1, 128)
    H2p = _round_up(H2, 128)
    # Targets live on the SUBLANE axis of the transposed output block.
    Tp = _round_up(max(T, 1), 8)

    # Batch tiling. 4096 amortizes per-grid-step overhead and still fits v7x's
    # 64 MiB per-core VMEM; v5e/v6e (128 MiB VMEM) may pass tile_b=8192. At large B
    # this yields many grid steps, keeping both v7x TensorCores fed via "parallel".
    TILE_B = min(tile_b, _round_up(B, 8))
    Bp = _round_up(B, TILE_B)

    def pad2(a, rows, cols):
        return jnp.pad(a, ((0, rows - a.shape[0]), (0, cols - a.shape[1])))

    # bf16 MXU inputs; biases stay f32 (added post-accumulation). x is NOT
    # lane-padded (that would 16x its DMA bytes for a ~1%-of-FLOPs matmul).
    xb = pad2(x, Bp, F_IN).astype(jnp.bfloat16)
    w1p = pad2(w1, F_IN, H1p).astype(jnp.bfloat16)
    w2p = pad2(w2, H1p, H2p).astype(jnp.bfloat16)
    w3tp = pad2(w3.T, Tp, H2p).astype(jnp.bfloat16)              # (Tp, H2p), pre-transposed
    b1p = pad2(b1.reshape(1, -1), 1, H1p).astype(jnp.float32)
    b2p = pad2(b2.reshape(1, -1), 1, H2p).astype(jnp.float32)
    b3p = pad2(b3.reshape(-1, 1), Tp, 1).astype(jnp.float32)     # (Tp, 1), broadcasts over lanes

    # Weights/biases: constant index_map -> VMEM-resident, never re-fetched across
    # the batch grid. (Default buffering kept; the ~100 KB extra is negligible next
    # to the h1/h2 intermediates.)
    resident = lambda a: pl.BlockSpec(a.shape, lambda i: (0, 0))

    # Scoped-VMEM limit: <= 48 MiB at the default tile (fits v7x's 64 MiB physical
    # budget); opened up for the 8192-row tiles allowed on v5e/v6e.
    vmem_limit = (48 if TILE_B <= 4096 else 96) * 1024 * 1024

    out_t = pl.pallas_call(
        multitask_kernel,
        out_shape=jax.ShapeDtypeStruct((Tp, Bp), jnp.float32),
        grid=(Bp // TILE_B,),
        in_specs=[
            pl.BlockSpec((TILE_B, F_IN), lambda i: (i, 0)),      # x tiled over batch
            resident(w1p), resident(b1p),
            resident(w2p), resident(b2p),
            resident(w3tp), resident(b3p),
        ],
        # Transposed output: batch on the lane axis, only Tp (=8 here) sublane rows.
        out_specs=pl.BlockSpec((Tp, TILE_B), lambda i: (0, i)),
        compiler_params=pltpu.CompilerParams(
            dimension_semantics=("parallel",),                   # megacore sharding on v7x
            vmem_limit_bytes=vmem_limit,
        ),
    )(xb, w1p, b1p, w2p, b2p, w3tp, b3p)

    # Compact result: this slice/transpose back to (B, T) touches only Tp=8 rows of
    # f32 (vs. the previous wrapper slice that re-read the full 128-lane padded block).
    return out_t[:T, :B].T


def init_params(key, num_targets):
    # Deterministic init matching the nn.Linear shapes: 8 -> 100 -> 20 -> num_targets.
    k1, k2, k3, k4, k5, k6 = jax.random.split(key, 6)
    w1 = jax.random.normal(k1, (8, 100), jnp.float32) * 0.1
    b1 = jax.random.normal(k2, (100,), jnp.float32) * 0.1
    w2 = jax.random.normal(k3, (100, 20), jnp.float32) * 0.1
    b2 = jax.random.normal(k4, (20,), jnp.float32) * 0.1
    w3 = jax.random.normal(k5, (20, num_targets), jnp.float32) * 0.1
    b3 = jax.random.normal(k6, (num_targets,), jnp.float32) * 0.1
    return (w1, b1, w2, b2, w3, b3)


def reference_forward(x, params):
    w1, b1, w2, b2, w3, b3 = params
    h1 = jnp.maximum(x @ w1 + b1, 0.0)
    h2 = jnp.maximum(h1 @ w2 + b2, 0.0)
    return jax.nn.sigmoid(h2 @ w3 + b3)


if __name__ == "__main__":
    key = jax.random.PRNGKey(0)
    kx, kp = jax.random.split(key)

    batch = 8
    num_targets = 4
    x = jax.random.normal(kx, (batch, 8), jnp.float32)
    params = init_params(kp, num_targets)

    out = jax.block_until_ready(multitask_forward(x, params))
    ref = reference_forward(x, params)

    assert out.shape == (batch, num_targets)
    # bf16 MXU inputs -> compare against the f32 reference at loosened tolerance.
    assert jnp.allclose(out, ref, atol=2e-2, rtol=2e-2), float(jnp.max(jnp.abs(out - ref)))

    print("KERNEL_OK")
</pallas_src>

<mosaic_0001>
module attributes {stable_mosaic.version = 11 : i64} {
  func.func @multitask_kernel(%arg0: i32, %arg1: memref<8x8xbf16, #tpu.memory_space<vmem>>, %arg2: memref<8x128xbf16, #tpu.memory_space<vmem>>, %arg3: memref<1x128xf32, #tpu.memory_space<vmem>>, %arg4: memref<128x128xbf16, #tpu.memory_space<vmem>>, %arg5: memref<1x128xf32, #tpu.memory_space<vmem>>, %arg6: memref<8x128xbf16, #tpu.memory_space<vmem>>, %arg7: memref<8x1xf32, #tpu.memory_space<vmem>>, %arg8: memref<8x8xf32, #tpu.memory_space<vmem>>) attributes {dimension_semantics = [#tpu.dimension_semantics<parallel>], iteration_bounds = array<i64: 1>, scalar_prefetch = 0 : i64, scratch_operands = 0 : i64, tpu.core_type = #tpu.core_type<tc>, window_params = [{transform_indices = @transform_0, window_bounds = array<i64: 8, 8>}, {pipeline_mode = #tpu.pipeline_mode<synchronous>, transform_indices = @transform_1, window_bounds = array<i64: 8, 128>}, {pipeline_mode = #tpu.pipeline_mode<synchronous>, transform_indices = @transform_2, window_bounds = array<i64: 1, 128>}, {pipeline_mode = #tpu.pipeline_mode<synchronous>, transform_indices = @transform_3, window_bounds = array<i64: 128, 128>}, {pipeline_mode = #tpu.pipeline_mode<synchronous>, transform_indices = @transform_4, window_bounds = array<i64: 1, 128>}, {pipeline_mode = #tpu.pipeline_mode<synchronous>, transform_indices = @transform_5, window_bounds = array<i64: 8, 128>}, {pipeline_mode = #tpu.pipeline_mode<synchronous>, transform_indices = @transform_6, window_bounds = array<i64: 8, 1>}, {transform_indices = @transform_7, window_bounds = array<i64: 8, 8>}]} {
    %c0 = arith.constant 0 : index
    %c0_0 = arith.constant 0 : index
    %0 = vector.load %arg1[%c0, %c0_0] : memref<8x8xbf16, #tpu.memory_space<vmem>>, vector<8x8xbf16>
    %c0_1 = arith.constant 0 : index
    %c0_2 = arith.constant 0 : index
    %1 = vector.load %arg2[%c0_1, %c0_2] : memref<8x128xbf16, #tpu.memory_space<vmem>>, vector<8x128xbf16>
    %cst = arith.constant dense<0.000000e+00> : vector<8x128xf32>
    %2 = tpu.matmul %0, %1, %cst {dimension_numbers = #tpu.dot_dimension_numbers<[1], [0], [0], [1], [0, 0, 1, 1], [], []>} : vector<8x8xbf16>, vector<8x128xbf16>, vector<8x128xf32> -> vector<8x128xf32>
    %c0_3 = arith.constant 0 : index
    %c0_4 = arith.constant 0 : index
    %3 = vector.load %arg3[%c0_3, %c0_4] : memref<1x128xf32, #tpu.memory_space<vmem>>, vector<1x128xf32>
    %4 = vector.broadcast %3 : vector<1x128xf32> to vector<8x128xf32>
    %5 = arith.addf %2, %4 : vector<8x128xf32>
    %cst_5 = arith.constant 0.000000e+00 : f32
    %6 = vector.broadcast %cst_5 : f32 to vector<8x128xf32>
    %7 = arith.maximumf %5, %6 : vector<8x128xf32>
    %8 = arith.truncf %7 : vector<8x128xf32> to vector<8x128xbf16>
    %c0_6 = arith.constant 0 : index
    %c0_7 = arith.constant 0 : index
    %9 = vector.load %arg4[%c0_6, %c0_7] : memref<128x128xbf16, #tpu.memory_space<vmem>>, vector<128x128xbf16>
    %cst_8 = arith.constant dense<0.000000e+00> : vector<8x128xf32>
    %10 = tpu.matmul %8, %9, %cst_8 {dimension_numbers = #tpu.dot_dimension_numbers<[1], [0], [0], [1], [0, 0, 1, 1], [], []>} : vector<8x128xbf16>, vector<128x128xbf16>, vector<8x128xf32> -> vector<8x128xf32>
    %c0_9 = arith.constant 0 : index
    %c0_10 = arith.constant 0 : index
    %11 = vector.load %arg5[%c0_9, %c0_10] : memref<1x128xf32, #tpu.memory_space<vmem>>, vector<1x128xf32>
    %12 = vector.broadcast %11 : vector<1x128xf32> to vector<8x128xf32>
    %13 = arith.addf %10, %12 : vector<8x128xf32>
    %cst_11 = arith.constant 0.000000e+00 : f32
    %14 = vector.broadcast %cst_11 : f32 to vector<8x128xf32>
    %15 = arith.maximumf %13, %14 : vector<8x128xf32>
    %c0_12 = arith.constant 0 : index
    %c0_13 = arith.constant 0 : index
    %16 = vector.load %arg6[%c0_12, %c0_13] : memref<8x128xbf16, #tpu.memory_space<vmem>>, vector<8x128xbf16>
    %17 = arith.truncf %15 : vector<8x128xf32> to vector<8x128xbf16>
    "tpu.trace_start"() <{level = 10 : i32, message = "tk,bk->tb"}> : () -> ()
    %cst_14 = arith.constant dense<0.000000e+00> : vector<8x8xf32>
    %18 = tpu.matmul %16, %17, %cst_14 {dimension_numbers = #tpu.dot_dimension_numbers<[1], [1], [0], [0], [0, 0, 1, 0], [], []>} : vector<8x128xbf16>, vector<8x128xbf16>, vector<8x8xf32> -> vector<8x8xf32>
    "tpu.trace_stop"() : () -> ()
    %c0_15 = arith.constant 0 : index
    %c0_16 = arith.constant 0 : index
    %19 = vector.load %arg7[%c0_15, %c0_16] : memref<8x1xf32, #tpu.memory_space<vmem>>, vector<8x1xf32>
    %20 = vector.broadcast %19 : vector<8x1xf32> to vector<8x8xf32>
    %21 = arith.addf %18, %20 : vector<8x8xf32>
    %cst_17 = arith.constant 5.000000e-01 : f32
    %22 = vector.broadcast %cst_17 : f32 to vector<8x8xf32>
    %23 = arith.mulf %22, %21 : vector<8x8xf32>
    %24 = math.tanh %23 : vector<8x8xf32>
    %cst_18 = arith.constant 1.000000e+00 : f32
    %25 = vector.broadcast %cst_18 : f32 to vector<8x8xf32>
    %26 = arith.addf %25, %24 : vector<8x8xf32>
    %cst_19 = arith.constant 5.000000e-01 : f32
    %27 = vector.broadcast %cst_19 : f32 to vector<8x8xf32>
    %28 = arith.mulf %27, %26 : vector<8x8xf32>
    %c0_20 = arith.constant 0 : index
    %c0_21 = arith.constant 0 : index
    %29 = vector.load %arg8[%c0_20, %c0_21] : memref<8x8xf32, #tpu.memory_space<vmem>>, vector<8x8xf32>
    tpu.vector_store %arg8[%c0_20, %c0_21], %28 {strides = array<i32>} : memref<8x8xf32, #tpu.memory_space<vmem>>, vector<8x8xf32>,
    return
  }
  func.func @transform_0(%arg0: i32) -> (i32, i32) {
    %c0_i32 = arith.constant 0 : i32
    %c0_i32_0 = arith.constant 0 : i32
    return %arg0, %c0_i32 : i32, i32
  }
  func.func @transform_1(%arg0: i32) -> (i32, i32) {
    %c0_i32 = arith.constant 0 : i32
    %c0_i32_0 = arith.constant 0 : i32
    %c0_i32_1 = arith.constant 0 : i32
    return %c0_i32, %c0_i32_0 : i32, i32
  }
  func.func @transform_2(%arg0: i32) -> (i32, i32) {
    %c0_i32 = arith.constant 0 : i32
    %c0_i32_0 = arith.constant 0 : i32
    %c0_i32_1 = arith.constant 0 : i32
    return %c0_i32, %c0_i32_0 : i32, i32
  }
  func.func @transform_3(%arg0: i32) -> (i32, i32) {
    %c0_i32 = arith.constant 0 : i32
    %c0_i32_0 = arith.constant 0 : i32
    %c0_i32_1 = arith.constant 0 : i32
    return %c0_i32, %c0_i32_0 : i32, i32
  }
  func.func @transform_4(%arg0: i32) -> (i32, i32) {
    %c0_i32 = arith.constant 0 : i32
    %c0_i32_0 = arith.constant 0 : i32
    %c0_i32_1 = arith.constant 0 : i32
    return %c0_i32, %c0_i32_0 : i32, i32
  }
  func.func @transform_5(%arg0: i32) -> (i32, i32) {
    %c0_i32 = arith.constant 0 : i32
    %c0_i32_0 = arith.constant 0 : i32
    %c0_i32_1 = arith.constant 0 : i32
    return %c0_i32, %c0_i32_0 : i32, i32
  }
  func.func @transform_6(%arg0: i32) -> (i32, i32) {
    %c0_i32 = arith.constant 0 : i32
    %c0_i32_0 = arith.constant 0 : i32
    %c0_i32_1 = arith.constant 0 : i32
    return %c0_i32, %c0_i32_0 : i32, i32
  }
  func.func @transform_7(%arg0: i32) -> (i32, i32) {
    %c0_i32 = arith.constant 0 : i32
    %c0_i32_0 = arith.constant 0 : i32
    return %c0_i32, %arg0 : i32, i32
  }
}

</mosaic_0001>

<bundles_post_ra>
// kernel: tpu_custom_call.1
= control target key start
LH: loop header
LB: loop body
LE: loop exit
PB: predicated region body
PF: predicated region fallthrough
CT: control target
= control target key end

     0   :  { %12 = vsyncpa [#allocation3], 0  ;;  %s497_s0 = inlined_call_operand.vmem [shape: bf16[8,8], index: 0, kind: input, shape index: {}]   ;;  %s498_s1 = inlined_call_operand.vmem [shape: bf16[8,128], index: 1, kind: input, shape index: {}]   ;;  %s499_s2 = inlined_call_operand.vmem [shape: f32[1,128], index: 2, kind: input, shape index: {}]   ;;  %s500_s3 = inlined_call_operand.hbm [shape: bf16[128,128], index: 3, kind: input, shape index: {}]   ;;  %s501_s4 = inlined_call_operand.vmem [shape: f32[1,128], index: 4, kind: input, shape index: {}]   ;;  %s502_s5 = inlined_call_operand.vmem [shape: bf16[8,128], index: 5, kind: input, shape index: {}]   ;;  %s503_s6 = inlined_call_operand.vmem [shape: f32[8,1], index: 6, kind: input, shape index: {}]   ;;  %s504_s7 = inlined_call_operand.hbm [shape: f32[8,8], index: 7, kind: output, shape index: {}]  }
   0x1   :  { %13 = vsyncpa [#allocation4], 0  ;;  %s403_s24 = smov [#allocation2]   ;;  %s355_s28 = scalar_lea.hbm %s500_s3, 1024 }
   0x2   :  { %s25_s25 = sshll.u32 %s403_s24, 4  ;;  %p356_p0 = scmp.ne.s32.totalorder %s500_s3, %s355_s28  ;;  %s26_s25 = int_to_ptr.vmem [resolvable:$true] %s25_s25 }
   0x3   :  { %p359_p1 = scmp.lt.u32.totalorder %s355_s28, %s500_s3 }
   0x5   :  { %p361_p2 = pnand %p359_p1, %p356_p0 }
   0x7   :  { %364 = shalt.err (!%p361_p2)
}
   0x8   :  { %s365_s10 = scalar_lea.vmem %s26_s25, 1024  ;;  %p370_p4 = scmp.lt.s32.totalorder %s26_s25, %s26_s25 }
   0x9   :  { %p366_p3 = scmp.ne.s32.totalorder %s26_s25, %s365_s10  ;;  %p371_p5 = scmp.lt.s32.totalorder %s365_s10, %s365_s10 }
   0xb   :  { %p372_p6 = por %p371_p5, %p370_p4 }
   0xd   :  { %p373_p7 = pnand %p372_p6, %p366_p3 }
   0xf   :  { %376 = shalt.err (!%p373_p7)
}
  0x10   :  { %s404_s11 = smov 64   ;;  %s405_s12 = smov 4  }
  0x11   :  { %31 = dma.hbm_to_vmem [thread:$0]  %s500_s3, 1024, %s26_s25, [#allocation3], %s404_s11, %s404_s11, %s405_s12  }
  0x12   :  { %399 = dma.done.wait [#allocation3], 1024  }
  0x13   :  { %400 = vsyncadd [#allocation3], 4294966272  ;;  %v406_v0 = vmov 0.0   ;;  %vm407_vm0 = vmmov 0   ;;  %vm55_vm1 = vcmask 1043456   ;;  %vm51_vm2 = vcmask 64512  }
  0x14   :  { %305 = vmatprep.subr.bf16.mxu0 %v406_v0  ;;  %307 = vmatprep.mubr.msk.bf16.mxu0 %vm407_vm0, %v406_v0  ;;  %v43_v1 = vld [vmem:[%s498_s1] sm:$0xf]  ;;  %v346_v5 = vld [vmem:[#allocation2 + $0x8] sm:$0xff]   ;;  %v347_v6 = vld [vmem:[#allocation2 + $0x10] sm:$0xff]   ;;  %v408_v21 = vmov 0  }
  0x15   :  { %311 = vmatprep.subr.bf16.mxu1 %v406_v0  ;;  %327 = vmatprep.mubr.msk.bf16.mxu1 %vm407_vm0, %v406_v0  ;;  %v57_v2 = vsel %vm55_vm1, %v43_v1, 0  ;;  %v345_v3 = vld [vmem:[#allocation2] sm:$0xff]   ;;  %v348_v7 = vld [vmem:[#allocation2 + $0x18] sm:$0xff]   ;;  %v350_v9 = vld [vmem:[#allocation2 + $0x28] sm:$0xff]  }
  0x16   :  { %306 = vmatpush3.bf16.msra.mxu0 %v57_v2  ;;  %v42_v4 = vld [vmem:[%s497_s0] sm:$0xf]  ;;  %312 = vmatpush3.bf16.msra.mxu1 %v345_v3  ;;  %v351_v10 = vld [vmem:[#allocation2 + $0x30] sm:$0xff]   ;;  %v352_v11 = vld [vmem:[#allocation2 + $0x38] sm:$0xff]  }
  0x17   :  { %331 = vmatprep.subr.bf16.mxu0 %v406_v0  ;;  %313 = vmatprep.subr.bf16.mxu1 %v406_v0  ;;  %v349_v8 = vld [vmem:[#allocation2 + $0x20] sm:$0xff]  }
  0x18   :  { %v281_v12 = vld [vmem:[%s499_s2] ss:$0 sm:$0xff]  ;;  %344 = vset.pattern.permute.xlu0 %v408_v21 }
  0x19   :  { %308 = vmatmul.mubr.msk.bf16.vlgmr.msra.gmra.mrb[0].mxu0 %vm51_vm2, %v42_v4  ;;  %v215_v20 = vld [vmem:[%s503_s6] sm:$0xff] }
  0x1a   :  { %333 = vmatprep.mubr.msk.bf16.mxu0 %vm407_vm0, %v406_v0  ;;  %314 = vmatpush3.bf16.msra.mxu1 %v346_v5  ;;  %v283_v22 = vld [vmem:[%s501_s4] ss:$0 sm:$0xff]  ;;  %s409_s4 = smov [#allocation5]  }
  0x1b   :  { %315 = vmatprep.subr.bf16.mxu1 %v406_v0  ;;  %218 = vperm.xlu0 %344, %v215_v20   ;;  %v213_v30 = vld [vmem:[%s502_s5] sm:$0xf]  ;;  %s272_s6 = sshll.u32 %s409_s4, 4  ;;  %s273_s6 = int_to_ptr.vmem [resolvable:$true] %s272_s6 }
  0x1c   :  { %s377_s23 = scalar_lea.vmem %s273_s6, 128  ;;  %p382_p9 = scmp.lt.s32.totalorder %s273_s6, %s273_s6 }
  0x1d   :  { %p378_p8 = scmp.ne.s32.totalorder %s273_s6, %s377_s23  ;;  %p383_p10 = scmp.lt.s32.totalorder %s377_s23, %s377_s23 }
  0x1e   :  { %316 = vmatpush3.bf16.msra.mxu1 %v347_v6 }
  0x1f   :  { %317 = vmatprep.subr.bf16.mxu1 %v406_v0  ;;  %p384_p11 = por %p383_p10, %p382_p9 }
  0x21   :  { %p385_p12 = pnand %p384_p11, %p378_p8 }
  0x22   :  { %318 = vmatpush3.bf16.msra.mxu1 %v348_v7 }
  0x23   :  { %319 = vmatprep.subr.bf16.mxu1 %v406_v0 }
  0x26   :  { %320 = vmatpush3.bf16.msra.mxu1 %v349_v8 }
  0x27   :  { %321 = vmatprep.subr.bf16.mxu1 %v406_v0 }
  0x2a   :  { %322 = vmatpush3.bf16.msra.mxu1 %v350_v9 }
  0x2b   :  { %323 = vmatprep.subr.bf16.mxu1 %v406_v0 }
  0x2e   :  { %324 = vmatpush3.bf16.msra.mxu1 %v351_v10 }
  0x2f   :  { %325 = vmatprep.subr.bf16.mxu1 %v406_v0 }
  0x32   :  { %326 = vmatpush3.bf16.msra.mxu1 %v352_v11 }
  0x9a   :  { %v219_v31 = vpop.permute.xlu0 %218 }
  0xec   :  { %v93_v13 = vpop.f32.mrb[0].mxu0 }
  0xed   :  { %v94_v14 = vadd.f32 %v281_v12, %v93_v13  ;;  %v309_v15 = vpop.f32.mrb[1].mxu0 }
  0xee   :  { %v96_v16 = vpop.f32.mrb[2].mxu0 }
  0xef   :  { %v99_v17 = vmax.f32 %v94_v14, 0.0  ;;  %v310_v18 = vpop.f32.mrb[3].mxu0 }
  0xf1   :  { %v100_v19 = vpack.c.bf16 %v99_v17, %v99_v17 }
  0xf3   :  { %328 = vmatmul.mubr.bf16.vlgmr.msra.gmra.mrb[0].mxu1 %v100_v19 }
 0x1c6   :  { %v206_v23 = vpop.f32.mrb[0].mxu1 }
 0x1c7   :  { %v207_v24 = vadd.f32 %v283_v22, %v206_v23  ;;  %v329_v25 = vpop.f32.mrb[1].mxu1 }
 0x1c8   :  { %v209_v26 = vpop.f32.mrb[2].mxu1 }
 0x1c9   :  { %v212_v27 = vmax.f32 %v207_v24, 0.0  ;;  %v330_v28 = vpop.f32.mrb[3].mxu1 }
 0x1cb   :  { %v214_v29 = vpack.c.bf16 %v212_v27, %v212_v27 }
 0x1cd   :  { %332 = vmatpush3.bf16.xpose.msra.mxu0 %v214_v29 }
 0x1d4   :  { %334 = vmatmul.mubr.bf16.vlgmr.msra.gmra.mrb[4].mxu0 %v213_v30 }
 0x2a7   :  { %v255_v32 = vpop.f32.mrb[4].mxu0 }
 0x2a8   :  { %v256_v33 = vadd.f32 %v255_v32, %v219_v31  ;;  %v335_v34 = vpop.f32.mrb[5].mxu0 }
 0x2a9   :  { %v258_v35 = vpop.f32.mrb[6].mxu0 }
 0x2aa   :  { %v261_v36 = vmul.f32 0.5, %v256_v33  ;;  %v336_v37 = vpop.f32.mrb[7].mxu0 }
 0x2ac   :  { %353 = vtanh.f32 %v261_v36 }
 0x2b6   :  { %v354_v38 = vpop.eup %353 }
 0x2b7   :  { %v263_v39 = vadd.f32 1.0, %v354_v38 }
 0x2b9   :  { %v264_v40 = vmul.f32 0.5, %v263_v39 }
 0x2bb   :  { %265 = vst.msk [vmem:[#allocation5] sm:$0xff] %vm51_vm2, %v264_v40 }
 0x2bc   :  { %388 = shalt.err (!%p385_p12)
}
 0x2bd   :  { %s389_s25 = scalar_lea.hbm %s504_s7, 128 }
 0x2be   :  { %p390_p13 = scmp.ne.s32.totalorder %s504_s7, %s389_s25  ;;  %p393_p0 = scmp.lt.u32.totalorder %s389_s25, %s504_s7 }
 0x2c0   :  { %p395_p1 = pnand %p393_p0, %p390_p13 }
 0x2c2   :  { %398 = shalt.err (!%p395_p1)
}
 0x2c3   :  { %275 = dma.vmem_to_hbm [thread:$0]  %s273_s6, 128, %s504_s7, [#allocation4]  }
 0x2c4   :  { %401 = dma.done.wait [#allocation4], 128  }
 0x2c5   :  { %402 = vsyncadd [#allocation4], 4294967168 }
 0x2c6   :  { %279 = vsyncpa [#allocation3], 1 }
 0x2c7   :  { %280 = vsyncpa [#allocation4], 1 }

</bundles_post_ra>
